<compile_context>
chip_gen: v7x
topology: tpu7x:2x2x1
jax: 0.10.0
libtpu: 0.0.40
codegen_flags: <defaults>
</compile_context>

<pallas_src>
import jax
import jax.numpy as jnp
from jax.experimental import pallas as pl
from jax.experimental.pallas import tpu as pltpu

_LANES = 128
_MAX_TILE_ROWS = 1024  # (1024, 128) f32 block = 512 KiB; fits default VMEM everywhere


def _make_kernel(*, rows, n_elems, tile_rows, need_mask):
    """Fused abs-mean + ternary-quantize kernel over grid (phase, tile)."""

    def kernel(x_ref, o_ref, acc_ref, mean_ref):
        p = pl.program_id(0)          # phase: 0 = abs-sum, 1 = quantize
        i = pl.program_id(1)          # tile index along rows
        last = pl.num_programs(1) - 1

        @pl.when((p == 0) & (i == 0))
        def _init():
            acc_ref[...] = jnp.zeros_like(acc_ref)

        @pl.when(p == 0)
        def _accumulate():
            xa = jnp.abs(x_ref[...].astype(jnp.float32))
            if need_mask:
                # Mask out-of-bounds rows of the ragged last tile (their
                # contents are undefined, so select before accumulating).
                row_ids = i * tile_rows + jax.lax.broadcasted_iota(
                    jnp.int32, (tile_rows, _LANES), 0)
                xa = jnp.where(row_ids < rows, xa, 0.0)
            acc_ref[...] += xa        # pure VPU, no cross-lane reduce per step

        @pl.when((p == 0) & (i == last))
        def _finalize_mean():
            # Single XLU reduction for the whole tensor, once.
            mean_ref[0] = jnp.sum(acc_ref[...]) / jnp.float32(n_elems)

        @pl.when(p == 1)
        def _quantize():
            m = mean_ref[0]
            y = jnp.round(x_ref[...].astype(jnp.float32) / m)
            o_ref[...] = jnp.clip(y, -1.0, 1.0).astype(o_ref.dtype)

    return kernel


@jax.jit
def ternary_quantize(x: jax.Array) -> jax.Array:
    """Pallas implementation of TernaryQuantization.forward. Any shape."""
    orig_shape = x.shape
    orig_dtype = x.dtype

    if jnp.issubdtype(orig_dtype, jnp.floating):
        io_dtype = orig_dtype
        xc = x
    else:
        io_dtype = jnp.float32
        xc = x.astype(jnp.float32)

    flat = xc.reshape(-1)
    n = flat.shape[0]

    # Only pad the (< 128 element) lane remainder; no full-tensor copy in the
    # common case where n is a multiple of 128.
    rem = n % _LANES
    padded = rem != 0
    if padded:
        flat = jnp.pad(flat, (0, _LANES - rem))
    rows = flat.shape[0] // _LANES
    x2d = flat.reshape(rows, _LANES)

    # Tile sizing: whole array as one block if small, else 1024-row blocks
    # with a cdiv grid and in-kernel masking of the ragged tail.
    if rows <= _MAX_TILE_ROWS:
        tile_rows = rows
    else:
        tile_rows = _MAX_TILE_ROWS
    n_tiles = pl.cdiv(rows, tile_rows)
    need_mask = (rows % tile_rows) != 0

    kernel = _make_kernel(
        rows=rows, n_elems=n, tile_rows=tile_rows, need_mask=need_mask)

    out2d = pl.pallas_call(
        kernel,
        out_shape=jax.ShapeDtypeStruct((rows, _LANES), io_dtype),
        grid_spec=pltpu.PrefetchScalarGridSpec(
            num_scalar_prefetch=0,
            grid=(2, n_tiles),
            in_specs=[pl.BlockSpec((tile_rows, _LANES), lambda p, i: (i, 0))],
            # Phase 0 pins the output block index to 0 (i * p == 0), so the
            # resident output buffer is only ever written back with phase-1
            # (correct) data; phase 1 walks the blocks normally.
            out_specs=pl.BlockSpec((tile_rows, _LANES), lambda p, i: (i * p, 0)),
            scratch_shapes=[
                pltpu.VMEM((tile_rows, _LANES), jnp.float32),  # |x| accumulator
                pltpu.SMEM((1,), jnp.float32),                 # mean(|x|)
            ],
        ),
        compiler_params=pltpu.CompilerParams(
            dimension_semantics=("arbitrary", "arbitrary"),
        ),
    )(x2d)

    out_flat = out2d.reshape(-1)
    if padded:
        out_flat = out_flat[:n]
    out = out_flat.reshape(orig_shape)
    if out.dtype != orig_dtype:
        out = out.astype(orig_dtype)
    return out


if __name__ == "__main__":
    key = jax.random.PRNGKey(0)
    # Small NCHW input consistent with a conv-style activation tensor.
    x = jax.random.normal(key, (2, 4, 16, 16), dtype=jnp.float32)

    out = ternary_quantize(x)
    out = jax.block_until_ready(out)

    # Reference check in plain JAX (same semantics as the PyTorch forward).
    mean_abs_ref = jnp.mean(jnp.abs(x))
    ref = jnp.clip(jnp.round(x / mean_abs_ref), -1.0, 1.0)
    assert out.shape == x.shape and out.dtype == x.dtype
    assert bool(jnp.all(out == ref)), "mismatch vs reference"

    print("KERNEL_OK")
</pallas_src>

<mosaic_0001>
module attributes {stable_mosaic.version = 11 : i64} {
  func.func @kernel(%arg0: i32, %arg1: i32, %arg2: memref<16x128xf32, #tpu.memory_space<vmem>>, %arg3: memref<16x128xf32, #tpu.memory_space<vmem>>, %arg4: memref<16x128xf32, #tpu.memory_space<vmem>>, %arg5: memref<1xf32, #tpu.memory_space<smem>>) attributes {dimension_semantics = [#tpu.dimension_semantics<arbitrary>, #tpu.dimension_semantics<arbitrary>], iteration_bounds = array<i64: 2, 1>, scalar_prefetch = 0 : i64, scratch_operands = 2 : i64, tpu.core_type = #tpu.core_type<tc>, window_params = [{transform_indices = @transform_0, window_bounds = array<i64: 16, 128>}, {transform_indices = @transform_1, window_bounds = array<i64: 16, 128>}]} {
    %c0_i32 = arith.constant 0 : i32
    %0 = arith.cmpi eq, %arg0, %c0_i32 : i32
    %c0_i32_0 = arith.constant 0 : i32
    %1 = arith.cmpi eq, %arg1, %c0_i32_0 : i32
    %2 = arith.andi %0, %1 : i1
    %3 = arith.extui %2 : i1 to i32
    %c0_i32_1 = arith.constant 0 : i32
    %4 = arith.cmpi ne, %3, %c0_i32_1 : i32
    scf.if %4 {
      %cst = arith.constant 0.000000e+00 : f32
      %16 = vector.broadcast %cst : f32 to vector<16x128xf32>
      %c0 = arith.constant 0 : index
      %c0_8 = arith.constant 0 : index
      %17 = vector.load %arg4[%c0, %c0_8] : memref<16x128xf32, #tpu.memory_space<vmem>>, vector<16x128xf32>
      tpu.vector_store %arg4[%c0, %c0_8], %16 {strides = array<i32>} : memref<16x128xf32, #tpu.memory_space<vmem>>, vector<16x128xf32>,
    } else {
    }
    %c0_i32_2 = arith.constant 0 : i32
    %5 = arith.cmpi eq, %arg0, %c0_i32_2 : i32
    %6 = arith.extui %5 : i1 to i32
    %c0_i32_3 = arith.constant 0 : i32
    %7 = arith.cmpi ne, %6, %c0_i32_3 : i32
    scf.if %7 {
      %c0 = arith.constant 0 : index
      %c0_8 = arith.constant 0 : index
      %16 = vector.load %arg2[%c0, %c0_8] : memref<16x128xf32, #tpu.memory_space<vmem>>, vector<16x128xf32>
      %17 = math.absf %16 : vector<16x128xf32>
      %c0_9 = arith.constant 0 : index
      %c0_10 = arith.constant 0 : index
      %18 = vector.load %arg4[%c0_9, %c0_10] : memref<16x128xf32, #tpu.memory_space<vmem>>, vector<16x128xf32>
      %19 = arith.addf %18, %17 : vector<16x128xf32>
      %c0_11 = arith.constant 0 : index
      %c0_12 = arith.constant 0 : index
      %20 = vector.load %arg4[%c0_11, %c0_12] : memref<16x128xf32, #tpu.memory_space<vmem>>, vector<16x128xf32>
      tpu.vector_store %arg4[%c0_11, %c0_12], %19 {strides = array<i32>} : memref<16x128xf32, #tpu.memory_space<vmem>>, vector<16x128xf32>,
    } else {
    }
    %c0_i32_4 = arith.constant 0 : i32
    %8 = arith.cmpi eq, %arg0, %c0_i32_4 : i32
    %c0_i32_5 = arith.constant 0 : i32
    %9 = arith.cmpi eq, %arg1, %c0_i32_5 : i32
    %10 = arith.andi %8, %9 : i1
    %11 = arith.extui %10 : i1 to i32
    %c0_i32_6 = arith.constant 0 : i32
    %12 = arith.cmpi ne, %11, %c0_i32_6 : i32
    scf.if %12 {
      %c0 = arith.constant 0 : index
      %c0_8 = arith.constant 0 : index
      %16 = vector.load %arg4[%c0, %c0_8] : memref<16x128xf32, #tpu.memory_space<vmem>>, vector<16x128xf32>
      %17 = vector.shape_cast %16 : vector<16x128xf32> to vector<1x16x128xf32>
      %cst = arith.constant dense<0.000000e+00> : vector<1xf32>
      %18 = vector.multi_reduction <add>, %17, %cst [1, 2] : vector<1x16x128xf32> to vector<1xf32>
      %19 = vector.shape_cast %18 : vector<1xf32> to vector<1x1x1xf32>
      %20 = vector.extract %19[0, 0, 0] : f32 from vector<1x1x1xf32>
      %cst_9 = arith.constant 2.048000e+03 : f32
      %21 = arith.divf %20, %cst_9 : f32
      %c0_10 = arith.constant 0 : index
      %22 = memref.load %arg5[%c0_10] : memref<1xf32, #tpu.memory_space<smem>>
      memref.store %21, %arg5[%c0_10] : memref<1xf32, #tpu.memory_space<smem>>
    } else {
    }
    %c1_i32 = arith.constant 1 : i32
    %13 = arith.cmpi eq, %arg0, %c1_i32 : i32
    %14 = arith.extui %13 : i1 to i32
    %c0_i32_7 = arith.constant 0 : i32
    %15 = arith.cmpi ne, %14, %c0_i32_7 : i32
    scf.if %15 {
      %c0 = arith.constant 0 : index
      %16 = memref.load %arg5[%c0] : memref<1xf32, #tpu.memory_space<smem>>
      %c0_8 = arith.constant 0 : index
      %c0_9 = arith.constant 0 : index
      %17 = vector.load %arg2[%c0_8, %c0_9] : memref<16x128xf32, #tpu.memory_space<vmem>>, vector<16x128xf32>
      %18 = vector.broadcast %16 : f32 to vector<16x128xf32>
      %19 = arith.divf %17, %18 : vector<16x128xf32>
      %20 = math.roundeven %19 : vector<16x128xf32>
      %cst = arith.constant -1.000000e+00 : f32
      %cst_10 = arith.constant 1.000000e+00 : f32
      %21 = vector.broadcast %cst : f32 to vector<16x128xf32>
      %22 = arith.maximumf %21, %20 : vector<16x128xf32>
      %23 = vector.broadcast %cst_10 : f32 to vector<16x128xf32>
      %24 = arith.minimumf %23, %22 : vector<16x128xf32>
      %c0_11 = arith.constant 0 : index
      %c0_12 = arith.constant 0 : index
      %25 = vector.load %arg3[%c0_11, %c0_12] : memref<16x128xf32, #tpu.memory_space<vmem>>, vector<16x128xf32>
      tpu.vector_store %arg3[%c0_11, %c0_12], %24 {strides = array<i32>} : memref<16x128xf32, #tpu.memory_space<vmem>>, vector<16x128xf32>,
    } else {
    }
    return
  }
  func.func @transform_0(%arg0: i32, %arg1: i32) -> (i32, i32) {
    %c0_i32 = arith.constant 0 : i32
    %c0_i32_0 = arith.constant 0 : i32
    return %arg1, %c0_i32 : i32, i32
  }
  func.func @transform_1(%arg0: i32, %arg1: i32) -> (i32, i32) {
    %0 = arith.muli %arg1, %arg0 : i32
    %c0_i32 = arith.constant 0 : i32
    %c0_i32_0 = arith.constant 0 : i32
    return %0, %c0_i32 : i32, i32
  }
}

</mosaic_0001>

<bundles_post_ra>
// kernel: ternary_quantize.1
= control target key start
LH: loop header
LB: loop body
LE: loop exit
PB: predicated region body
PF: predicated region fallthrough
CT: control target
= control target key end

     0   :  { %s348_s6 = smov 0   ;;  %s350_s7 = smov 0   ;;  %s402_s0 = inlined_call_operand.vmem [shape: f32[16,128], index: 0, kind: input, shape index: {}]   ;;  %s403_s1 = inlined_call_operand.vmem [shape: f32[16,128], index: 1, kind: output, shape index: {}]  }
   0x1   :  { %s352_s8 = smov 0  }
   0x2 LB: > { %s23_s9 = sadd.s32 1, %s331_s7  ;;  %p271_p0 = scmp.ge.s32.totalorder %s335_s8, 1  ;;  %s335_s8 = sphi %s352_s8, %s11_s8   ;;  %s331_s7 = sphi %s350_s7, %s405_s7   ;;  %s327_s6 = sphi %s348_s6, %s404_s6  }
   0x3   : > { %p25_p1 = scmp.ge.s32.totalorder %s23_s9, 2  ;;  %p102_p2 = scmp.lt.s32.totalorder %s335_s8, 3 }
   0x5   : > { %s407_s9 = smov (%p25_p1, %s23_s9), 0  ;;  %p103_p3 = pnand %p271_p0, %p102_p2 }
   0x6   : > { %p137_p4 = scmp.eq.s32.totalorder (!%p103_p3), %s327_s6, 0 }
   0x7   : > { %106 = sbr.rel (%p103_p3) target bundleno = 270 (0x10e), region = 24 }
   0xe   : > { %142 = sbr.rel (!%p137_p4) target bundleno = 21 (0x15), region = 28  ;;  %v337_v0 = vmov (%p137_p4), 0.0  }
   0xf   : > { %143 = vst [vmem:[#allocation2] sm:$0xff] (%p137_p4), %v337_v0  ;;  %144 = vst [vmem:[#allocation2 + $0x8] sm:$0xff] (%p137_p4), %v337_v0 }
  0x15 PF: > { %p273_p5 = scmp.ne.s32.totalorder %s327_s6, 0 }
  0x16   : > { %v148_v1 = vld [vmem:[%s402_s0] sm:$0xff] (!%p273_p5)  ;;  %v149_v3 = vld [vmem:[%s402_s0 + $0x8] sm:$0xff] (!%p273_p5) }
  0x17   : > { %147 = sbr.rel (%p273_p5) target bundleno = 30 (0x1e), region = 32  ;;  %v152_v2 = vld [vmem:[#allocation2] sm:$0xff] (!%p273_p5)  ;;  %v150_v4 = vand.u32 (!%p273_p5), 2147483647, %v148_v1  ;;  %v151_v5 = vand.u32 (!%p273_p5), 2147483647, %v149_v3 }
  0x18   : > { %v153_v6 = vld [vmem:[#allocation2 + $0x8] sm:$0xff] (!%p273_p5) }
  0x19   : > { %v154_v7 = vadd.f32 (!%p273_p5), %v152_v2, %v150_v4  ;;  %v155_v8 = vadd.f32 (!%p273_p5), %v153_v6, %v151_v5 }
  0x1b   : > { %156 = vst [vmem:[#allocation2] sm:$0xff] (!%p273_p5), %v154_v7  ;;  %157 = vst [vmem:[#allocation2 + $0x8] sm:$0xff] (!%p273_p5), %v155_v8 }
  0x1e PF: > { %159 = sbr.rel (!%p137_p4) target bundleno = 244 (0xf4), region = 36 }
  0x22   : > { %v160_v9 = vld [vmem:[#allocation2] sm:$0xff] (%p137_p4)  ;;  %v161_v10 = vld [vmem:[#allocation2 + $0x8] sm:$0xff] (%p137_p4) }
  0x23   : > { %v162_v11 = vadd.f32 (%p137_p4), %v161_v10, %v160_v9 }
  0x25   : > { %163 = vadd.xlane.f32.xlu0 %v162_v11 }
  0xb2   : > { %v164_v12 = vpop.xlane.xlu0 %163 }
  0xb3   : > { %v165_v13 = vrot.slane %v164_v12, 4 }
  0xb5   : > { %v166_v14 = vadd.f32 %v165_v13, %v164_v12 }
  0xb7   : > { %v167_v15 = vrot.slane %v166_v14, 2 }
  0xb9   : > { %v168_v16 = vadd.f32 %v167_v15, %v166_v14 }
  0xbb   : > { %v169_v17 = vrot.slane %v168_v16, 1 }
  0xbd   : > { %v170_v18 = vadd.f32 %v169_v17, %v168_v16 }
  0xbf   : > { %282 = vpush %v170_v18 }
  0xf0   : > { %s283_s14 = spop %282 }
  0xf1   : > { %s174_s15 = smul.f32 0.00048828125, %s283_s14 }
  0xf3   : > { %176 = sst [smem:[#allocation3]] %s174_s15 }
  0xf4 PF: > { %p274_p6 = scmp.ne.s32.totalorder %s327_s6, 1 }
  0xf5   : > { %s181_s16 = sld [smem:[#allocation3]] (!%p274_p6)  ;;  %v182_v20 = vld [vmem:[%s402_s0] sm:$0xff] (!%p274_p6)  ;;  %v183_v21 = vld [vmem:[%s402_s0 + $0x8] sm:$0xff] (!%p274_p6) }
  0xf6   : > { %180 = sbr.rel (%p274_p6) target bundleno = 270 (0x10e), region = 40 }
  0xfb   : > { %v184_v19 = vstv (!%p274_p6), %s181_s16 }
  0xfc   : > { %311 = vrcp.f32 (!%p274_p6), %v184_v19 }
 0x106   : > { %v312_v22 = vpop.eup %311 }
 0x107   : > { %v186_v23 = vmul.f32 %v312_v22, %v182_v20  ;;  %v187_v24 = vmul.f32 %v312_v22, %v183_v21 }
 0x109   : > { %v284_v25 = vround.rtne.f32 %v186_v23  ;;  %v285_v26 = vround.rtne.f32 %v187_v24 }
 0x10b   : > { %v275_v27 = vclamps-f32 %v284_v25, 1.0  ;;  %v276_v28 = vclamps-f32 %v285_v26, 1.0 }
 0x10d   : > { %194 = vst [vmem:[%s403_s1] sm:$0xff] %v275_v27  ;;  %195 = vst [vmem:[%s403_s1 + $0x8] sm:$0xff] %v276_v28 }
 0x10e PF: > { %s11_s8 = sadd.s32 1, %s335_s8   ;;  %s404_s6 = smov %s331_s7 }
 0x10f   : > { %p8_p7 = scmp.ge.s32.totalorder %s11_s8, 4   ;;  %s405_s7 = smov %s407_s9 }
 0x111   :  { %10 = sbr.rel (!%p8_p7) target bundleno = 2 (0x2), region = 71 }

</bundles_post_ra>
